<compile_context>
chip_gen: v7x
topology: tpu7x:2x2x1
jax: 0.10.0
libtpu: 0.0.40
codegen_flags: <defaults>
</compile_context>

<pallas_src>
import math
import functools

import jax
import jax.numpy as jnp
from jax import lax
from jax.experimental import pallas as pl
from jax.experimental.pallas import tpu as pltpu

LN_EPS = 1e-5
NEG_BIG = -1e30  # finite "masked" fill; exp underflows to exactly 0 and composes with tiling/padding


def _gelu_exact(z):
    # torch nn.GELU() default: exact erf-based GELU (kept in f32)
    return 0.5 * z * (1.0 + lax.erf(z * (1.0 / math.sqrt(2.0))))


def transformer_block_kernel(
    x_ref,
    g1_ref, b1_ref,
    wqkv_ref, bqkv_ref,          # fused QKV: (D, 3D), (1, 3D)  (scale folded into the Q slab)
    wo_ref, bo_ref,              # out proj in original layout: (D, D), (1, D)
    g2_ref, b2_ref,
    w1_ref, bfc1_ref, w2_ref, bfc2_ref,
    o_ref,
    *, num_heads: int, compute_dtype,
):
    x = x_ref[0]                          # (S, D) f32
    S, D = x.shape
    H = num_heads
    hd = D // H
    cdt = compute_dtype
    exact_div = jnp.dtype(cdt) == jnp.dtype(jnp.float32)

    # ---- LayerNorm 1 (f32 statistics) ----
    mu = jnp.mean(x, axis=-1, keepdims=True)
    var = jnp.mean(jnp.square(x - mu), axis=-1, keepdims=True)
    h = (x - mu) * lax.rsqrt(var + LN_EPS) * g1_ref[...] + b1_ref[...]

    # ---- fused QKV projection: one wide MXU matmul (scale pre-folded into Wq/bq) ----
    qkv = jnp.dot(h.astype(cdt), wqkv_ref[...],
                  preferred_element_type=jnp.float32) + bqkv_ref[...]      # (S, 3D) f32
    qkv_c = qkv.astype(cdt)                                                # single cast

    q3 = qkv_c[:, 0 * D:1 * D].reshape(S, H, hd)
    k3 = qkv_c[:, 1 * D:2 * D].reshape(S, H, hd)
    v3 = qkv_c[:, 2 * D:3 * D].reshape(S, H, hd)

    # ---- additive causal mask, computed once (0 / NEG_BIG), broadcast over heads ----
    row = lax.broadcasted_iota(jnp.int32, (S, S), 0)
    col = lax.broadcasted_iota(jnp.int32, (S, S), 1)
    mask_add = jnp.where(col > row, NEG_BIG, 0.0).astype(jnp.float32)      # (S, S)

    # ---- head-batched attention (bounds liveness, lets Mosaic pipeline MXU pushes) ----
    sc = jnp.einsum("qhd,khd->hqk", q3, k3,
                    preferred_element_type=jnp.float32)                    # (H, S, S) f32
    sc = sc + mask_add

    m = jnp.max(sc, axis=-1, keepdims=True)
    e = jnp.exp(sc - m)
    denom = jnp.sum(e, axis=-1, keepdims=True)
    if exact_div:
        p = e / denom                                   # strict f32 path: exact divide
    else:
        p = e * pl.reciprocal(denom, approx=True)       # EUP reciprocal on the bf16 fast path

    ctx = jnp.einsum("hqk,khd->qhd", p.astype(cdt), v3,
                     preferred_element_type=jnp.float32)                   # (S, H, hd) f32

    # ---- consolidated output projection: one K=D matmul with Wo in its original layout ----
    attn = jnp.dot(ctx.reshape(S, D).astype(cdt), wo_ref[...],
                   preferred_element_type=jnp.float32) + bo_ref[...]

    # ---- residual 1 ----
    x1 = x + attn

    # ---- LayerNorm 2 (f32 statistics) ----
    mu2 = jnp.mean(x1, axis=-1, keepdims=True)
    var2 = jnp.mean(jnp.square(x1 - mu2), axis=-1, keepdims=True)
    h2 = (x1 - mu2) * lax.rsqrt(var2 + LN_EPS) * g2_ref[...] + b2_ref[...]

    # ---- FeedForward: fc1 -> GELU(f32) -> fc2 ----
    f = jnp.dot(h2.astype(cdt), w1_ref[...],
                preferred_element_type=jnp.float32) + bfc1_ref[...]
    f = _gelu_exact(f)
    f = jnp.dot(f.astype(cdt), w2_ref[...],
                preferred_element_type=jnp.float32) + bfc2_ref[...]

    # ---- residual 2 ----
    o_ref[0] = (x1 + f).astype(o_ref.dtype)


def transformer_block(x, params, num_heads, *, compute_dtype=jnp.bfloat16):
    B, S, D = x.shape
    F = params["w1"].shape[1]
    hd = D // num_heads
    scale = 1.0 / math.sqrt(hd)
    cdt = compute_dtype

    # Pre-pack weights once outside the kernel:
    #   * fused QKV with the attention scale folded into the Q slab (weights + bias),
    #   * everything stored in the matmul compute dtype (bf16 halves weight DMA / VMEM bytes).
    w_qkv = jnp.concatenate(
        [params["wq"] * scale, params["wk"], params["wv"]], axis=1).astype(cdt)   # (D, 3D)
    b_qkv = jnp.concatenate(
        [params["bq"] * scale, params["bk"], params["bv"]], axis=1)               # (1, 3D) f32
    wo = params["wo"].astype(cdt)                                                  # (D, D)
    w1 = params["w1"].astype(cdt)                                                  # (D, F)
    w2 = params["w2"].astype(cdt)                                                  # (F, D)

    def full(shape):
        return pl.BlockSpec(shape, lambda b: (0,) * len(shape))

    in_specs = [
        pl.BlockSpec((1, S, D), lambda b: (b, 0, 0)),   # x
        full((1, D)), full((1, D)),                     # ln1 gamma/beta
        full((D, 3 * D)), full((1, 3 * D)),             # fused Wqkv, bqkv
        full((D, D)), full((1, D)),                     # Wo (original layout), bo
        full((1, D)), full((1, D)),                     # ln2 gamma/beta
        full((D, F)), full((1, F)),                     # fc1
        full((F, D)), full((1, D)),                     # fc2
    ]

    # Generation-aware VMEM budget: (double-buffered) operands + activation headroom,
    # clamped to [32 MiB, ~85% of this chip's physical VMEM] (v5e/v6e: ~108 MiB, v7x: ~54 MiB).
    itw = jnp.dtype(cdt).itemsize
    wbytes = itw * (D * 3 * D + D * D + D * F + F * D)
    sbytes = 4 * (3 * D + 6 * D + F)
    actbytes = 4 * (S * 3 * D + 3 * num_heads * S * S + S * S + 8 * S * D + S * F)
    iobytes = 4 * 4 * S * D
    needed = 2 * (wbytes + sbytes) + actbytes + iobytes
    try:
        cap = int(0.85 * pltpu.get_tpu_info().vmem_capacity_bytes)
    except Exception:
        cap = 64 * 1024 * 1024
    cap = max(cap, 32 * 1024 * 1024)
    vmem_limit = int(min(max(needed, 32 * 1024 * 1024), cap))

    kernel = functools.partial(transformer_block_kernel,
                               num_heads=num_heads, compute_dtype=cdt)

    return pl.pallas_call(
        kernel,
        out_shape=jax.ShapeDtypeStruct((B, S, D), x.dtype),
        grid=(B,),
        in_specs=in_specs,
        out_specs=pl.BlockSpec((1, S, D), lambda b: (b, 0, 0)),
        compiler_params=pltpu.CompilerParams(
            dimension_semantics=("parallel",),
            vmem_limit_bytes=vmem_limit),
    )(
        x,
        params["g1"], params["b1"],
        w_qkv, b_qkv, wo, params["bo"],
        params["g2"], params["b2"],
        w1, params["bfc1"], w2, params["bfc2"],
    )


def reference_block(x, params, num_heads):
    """Pure-JAX f32 reference of the PyTorch forward (dropout = identity)."""
    B, S, D = x.shape
    hd = D // num_heads
    scale = 1.0 / math.sqrt(hd)

    def ln(z, g, b):
        mu = jnp.mean(z, axis=-1, keepdims=True)
        var = jnp.mean((z - mu) ** 2, axis=-1, keepdims=True)
        return (z - mu) * lax.rsqrt(var + LN_EPS) * g + b

    h = ln(x, params["g1"], params["b1"])
    q = h @ params["wq"] + params["bq"]
    k = h @ params["wk"] + params["bk"]
    v = h @ params["wv"] + params["bv"]
    q = q.reshape(B, S, num_heads, hd).transpose(0, 2, 1, 3)
    k = k.reshape(B, S, num_heads, hd).transpose(0, 2, 1, 3)
    v = v.reshape(B, S, num_heads, hd).transpose(0, 2, 1, 3)
    sc = jnp.einsum("bhqd,bhkd->bhqk", q, k) * scale
    mask = jnp.triu(jnp.ones((S, S), bool), k=1)
    sc = jnp.where(mask, -jnp.inf, sc)
    w = jax.nn.softmax(sc, axis=-1)
    o = jnp.einsum("bhqk,bhkd->bhqd", w, v).transpose(0, 2, 1, 3).reshape(B, S, D)
    o = o @ params["wo"] + params["bo"]
    x1 = x + o
    h2 = ln(x1, params["g2"], params["b2"])
    f = h2 @ params["w1"] + params["bfc1"]
    f = 0.5 * f * (1.0 + lax.erf(f / math.sqrt(2.0)))
    f = f @ params["w2"] + params["bfc2"]
    return x1 + f


def init_params(key, d_model, ff_dim):
    ks = jax.random.split(key, 8)
    s = 0.02
    return {
        "g1": jnp.ones((1, d_model), jnp.float32),
        "b1": jnp.zeros((1, d_model), jnp.float32),
        "g2": jnp.ones((1, d_model), jnp.float32),
        "b2": jnp.zeros((1, d_model), jnp.float32),
        "wq": s * jax.random.normal(ks[0], (d_model, d_model), jnp.float32),
        "bq": jnp.zeros((1, d_model), jnp.float32),
        "wk": s * jax.random.normal(ks[1], (d_model, d_model), jnp.float32),
        "bk": jnp.zeros((1, d_model), jnp.float32),
        "wv": s * jax.random.normal(ks[2], (d_model, d_model), jnp.float32),
        "bv": jnp.zeros((1, d_model), jnp.float32),
        "wo": s * jax.random.normal(ks[3], (d_model, d_model), jnp.float32),
        "bo": s * jax.random.normal(ks[4], (1, d_model), jnp.float32),
        "w1": s * jax.random.normal(ks[5], (d_model, ff_dim), jnp.float32),
        "bfc1": s * jax.random.normal(ks[6], (1, ff_dim), jnp.float32),
        "w2": s * jax.random.normal(ks[7], (ff_dim, d_model), jnp.float32),
        "bfc2": jnp.zeros((1, d_model), jnp.float32),
    }


if __name__ == "__main__":
    B, S, d_model, num_heads, ff_dim = 2, 8, 32, 4, 64

    key = jax.random.PRNGKey(0)
    kx, kp = jax.random.split(key)
    x = jax.random.normal(kx, (B, S, d_model), jnp.float32)
    params = init_params(kp, d_model, ff_dim)

    ref = reference_block(x, params, num_heads)

    # Strict check: f32 compute path (exact softmax divide -> should track the pure-JAX ref closely).
    out_f32 = jax.block_until_ready(
        transformer_block(x, params, num_heads, compute_dtype=jnp.float32))
    assert out_f32.shape == (B, S, d_model)
    assert jnp.allclose(out_f32, ref, atol=2e-3, rtol=2e-3), "f32 kernel mismatch vs reference"

    # Fast path: bf16 matmul operands, f32 accumulation / statistics, approx EUP reciprocal.
    out_bf16 = jax.block_until_ready(
        transformer_block(x, params, num_heads, compute_dtype=jnp.bfloat16))
    assert out_bf16.shape == (B, S, d_model)
    assert jnp.allclose(out_bf16, ref, atol=3e-2, rtol=3e-2), "bf16 kernel mismatch vs reference"

    print("KERNEL_OK")
</pallas_src>

<mosaic_0001>
module attributes {stable_mosaic.version = 11 : i64} {
  func.func @transformer_block_kernel(%arg0: i32, %arg1: memref<1x8x32xf32, #tpu.memory_space<vmem>>, %arg2: memref<1x32xf32, #tpu.memory_space<vmem>>, %arg3: memref<1x32xf32, #tpu.memory_space<vmem>>, %arg4: memref<32x96xf32, #tpu.memory_space<vmem>>, %arg5: memref<1x96xf32, #tpu.memory_space<vmem>>, %arg6: memref<32x32xf32, #tpu.memory_space<vmem>>, %arg7: memref<1x32xf32, #tpu.memory_space<vmem>>, %arg8: memref<1x32xf32, #tpu.memory_space<vmem>>, %arg9: memref<1x32xf32, #tpu.memory_space<vmem>>, %arg10: memref<32x64xf32, #tpu.memory_space<vmem>>, %arg11: memref<1x64xf32, #tpu.memory_space<vmem>>, %arg12: memref<64x32xf32, #tpu.memory_space<vmem>>, %arg13: memref<1x32xf32, #tpu.memory_space<vmem>>, %arg14: memref<1x8x32xf32, #tpu.memory_space<vmem>>) attributes {dimension_semantics = [#tpu.dimension_semantics<parallel>], iteration_bounds = array<i64: 2>, scalar_prefetch = 0 : i64, scratch_operands = 0 : i64, tpu.core_type = #tpu.core_type<tc>, window_params = [{transform_indices = @transform_0, window_bounds = array<i64: 1, 8, 32>}, {pipeline_mode = #tpu.pipeline_mode<synchronous>, transform_indices = @transform_1, window_bounds = array<i64: 1, 32>}, {pipeline_mode = #tpu.pipeline_mode<synchronous>, transform_indices = @transform_2, window_bounds = array<i64: 1, 32>}, {pipeline_mode = #tpu.pipeline_mode<synchronous>, transform_indices = @transform_3, window_bounds = array<i64: 32, 96>}, {pipeline_mode = #tpu.pipeline_mode<synchronous>, transform_indices = @transform_4, window_bounds = array<i64: 1, 96>}, {pipeline_mode = #tpu.pipeline_mode<synchronous>, transform_indices = @transform_5, window_bounds = array<i64: 32, 32>}, {pipeline_mode = #tpu.pipeline_mode<synchronous>, transform_indices = @transform_6, window_bounds = array<i64: 1, 32>}, {pipeline_mode = #tpu.pipeline_mode<synchronous>, transform_indices = @transform_7, window_bounds = array<i64: 1, 32>}, {pipeline_mode = #tpu.pipeline_mode<synchronous>, transform_indices = @transform_8, window_bounds = array<i64: 1, 32>}, {pipeline_mode = #tpu.pipeline_mode<synchronous>, transform_indices = @transform_9, window_bounds = array<i64: 32, 64>}, {pipeline_mode = #tpu.pipeline_mode<synchronous>, transform_indices = @transform_10, window_bounds = array<i64: 1, 64>}, {pipeline_mode = #tpu.pipeline_mode<synchronous>, transform_indices = @transform_11, window_bounds = array<i64: 64, 32>}, {pipeline_mode = #tpu.pipeline_mode<synchronous>, transform_indices = @transform_12, window_bounds = array<i64: 1, 32>}, {transform_indices = @transform_13, window_bounds = array<i64: 1, 8, 32>}]} {
    %c0 = arith.constant 0 : index
    %c0_0 = arith.constant 0 : index
    %c0_1 = arith.constant 0 : index
    %0 = vector.load %arg1[%c0, %c0_0, %c0_1] : memref<1x8x32xf32, #tpu.memory_space<vmem>>, vector<1x8x32xf32>
    %1 = vector.shape_cast %0 : vector<1x8x32xf32> to vector<8x32xf32>
    %cst = arith.constant dense<0.000000e+00> : vector<8xf32>
    %2 = vector.multi_reduction <add>, %1, %cst [1] : vector<8x32xf32> to vector<8xf32>
    %3 = vector.shape_cast %2 : vector<8xf32> to vector<8x1xf32>
    %cst_2 = arith.constant 3.200000e+01 : f32
    %4 = vector.broadcast %cst_2 : f32 to vector<8x1xf32>
    %5 = arith.divf %3, %4 : vector<8x1xf32>
    %6 = vector.broadcast %5 : vector<8x1xf32> to vector<8x32xf32>
    %7 = arith.subf %1, %6 : vector<8x32xf32>
    %8 = arith.mulf %7, %7 : vector<8x32xf32>
    %cst_3 = arith.constant dense<0.000000e+00> : vector<8xf32>
    %9 = vector.multi_reduction <add>, %8, %cst_3 [1] : vector<8x32xf32> to vector<8xf32>
    %10 = vector.shape_cast %9 : vector<8xf32> to vector<8x1xf32>
    %cst_4 = arith.constant 3.200000e+01 : f32
    %11 = vector.broadcast %cst_4 : f32 to vector<8x1xf32>
    %12 = arith.divf %10, %11 : vector<8x1xf32>
    %13 = vector.broadcast %5 : vector<8x1xf32> to vector<8x32xf32>
    %14 = arith.subf %1, %13 : vector<8x32xf32>
    %cst_5 = arith.constant 9.99999974E-6 : f32
    %15 = vector.broadcast %cst_5 : f32 to vector<8x1xf32>
    %16 = arith.addf %12, %15 : vector<8x1xf32>
    %17 = math.rsqrt %16 : vector<8x1xf32>
    %18 = vector.broadcast %17 : vector<8x1xf32> to vector<8x32xf32>
    %19 = arith.mulf %14, %18 : vector<8x32xf32>
    %c0_6 = arith.constant 0 : index
    %c0_7 = arith.constant 0 : index
    %20 = vector.load %arg2[%c0_6, %c0_7] : memref<1x32xf32, #tpu.memory_space<vmem>>, vector<1x32xf32>
    %21 = vector.broadcast %20 : vector<1x32xf32> to vector<8x32xf32>
    %22 = arith.mulf %19, %21 : vector<8x32xf32>
    %c0_8 = arith.constant 0 : index
    %c0_9 = arith.constant 0 : index
    %23 = vector.load %arg3[%c0_8, %c0_9] : memref<1x32xf32, #tpu.memory_space<vmem>>, vector<1x32xf32>
    %24 = vector.broadcast %23 : vector<1x32xf32> to vector<8x32xf32>
    %25 = arith.addf %22, %24 : vector<8x32xf32>
    %c0_10 = arith.constant 0 : index
    %c0_11 = arith.constant 0 : index
    %26 = vector.load %arg4[%c0_10, %c0_11] : memref<32x96xf32, #tpu.memory_space<vmem>>, vector<32x96xf32>
    %cst_12 = arith.constant dense<0.000000e+00> : vector<8x96xf32>
    %27 = tpu.matmul %25, %26, %cst_12 {dimension_numbers = #tpu.dot_dimension_numbers<[1], [0], [0], [1], [0, 0, 1, 1], [], []>} : vector<8x32xf32>, vector<32x96xf32>, vector<8x96xf32> -> vector<8x96xf32>
    %c0_13 = arith.constant 0 : index
    %c0_14 = arith.constant 0 : index
    %28 = vector.load %arg5[%c0_13, %c0_14] : memref<1x96xf32, #tpu.memory_space<vmem>>, vector<1x96xf32>
    %29 = vector.broadcast %28 : vector<1x96xf32> to vector<8x96xf32>
    %30 = arith.addf %27, %29 : vector<8x96xf32>
    %31 = vector.extract_strided_slice %30 {offsets = [0, 0], sizes = [8, 32], strides = [1, 1]} : vector<8x96xf32> to vector<8x32xf32>
    %32 = vector.shape_cast %31 : vector<8x32xf32> to vector<8x4x8xf32>
    %33 = vector.extract_strided_slice %30 {offsets = [0, 32], sizes = [8, 32], strides = [1, 1]} : vector<8x96xf32> to vector<8x32xf32>
    %34 = vector.shape_cast %33 : vector<8x32xf32> to vector<8x4x8xf32>
    %35 = vector.extract_strided_slice %30 {offsets = [0, 64], sizes = [8, 32], strides = [1, 1]} : vector<8x96xf32> to vector<8x32xf32>
    %36 = vector.shape_cast %35 : vector<8x32xf32> to vector<8x4x8xf32>
    %37 = tpu.iota {dimensions = array<i32: 0>} : vector<8x8xi32>
    %38 = tpu.iota {dimensions = array<i32: 1>} : vector<8x8xi32>
    %39 = arith.cmpi sgt, %38, %37 : vector<8x8xi32>
    %cst_15 = arith.constant -1.000000e+30 : f32
    %cst_16 = arith.constant 0.000000e+00 : f32
    %40 = vector.broadcast %cst_15 : f32 to vector<8x8xf32>
    %41 = vector.broadcast %cst_16 : f32 to vector<8x8xf32>
    %42 = arith.select %39, %40, %41 : vector<8x8xi1>, vector<8x8xf32>
    "tpu.trace_start"() <{level = 10 : i32, message = "qhd,khd->hqk"}> : () -> ()
    %cst_17 = arith.constant dense<0.000000e+00> : vector<4x8x8xf32>
    %43 = tpu.matmul %32, %34, %cst_17 {dimension_numbers = #tpu.dot_dimension_numbers<[2], [2], [0], [0], [0, 1, 0, 0, 1, 0], [1], [1]>} : vector<8x4x8xf32>, vector<8x4x8xf32>, vector<4x8x8xf32> -> vector<4x8x8xf32>
    "tpu.trace_stop"() : () -> ()
    %44 = vector.shape_cast %42 : vector<8x8xf32> to vector<1x8x8xf32>
    %45 = vector.broadcast %44 : vector<1x8x8xf32> to vector<4x8x8xf32>
    %46 = arith.addf %43, %45 : vector<4x8x8xf32>
    %cst_18 = arith.constant dense<0xFF800000> : vector<4x8xf32>
    %47 = vector.multi_reduction <maximumf>, %46, %cst_18 [2] : vector<4x8x8xf32> to vector<4x8xf32>
    %48 = vector.shape_cast %47 : vector<4x8xf32> to vector<4x8x1xf32>
    %49 = vector.broadcast %48 : vector<4x8x1xf32> to vector<4x8x8xf32>
    %50 = arith.subf %46, %49 : vector<4x8x8xf32>
    %51 = math.exp %50 : vector<4x8x8xf32>
    %cst_19 = arith.constant dense<0.000000e+00> : vector<4x8xf32>
    %52 = vector.multi_reduction <add>, %51, %cst_19 [2] : vector<4x8x8xf32> to vector<4x8xf32>
    %53 = vector.shape_cast %52 : vector<4x8xf32> to vector<4x8x1xf32>
    %54 = vector.broadcast %53 : vector<4x8x1xf32> to vector<4x8x8xf32>
    %55 = arith.divf %51, %54 : vector<4x8x8xf32>
    "tpu.trace_start"() <{level = 10 : i32, message = "hqk,khd->qhd"}> : () -> ()
    %cst_20 = arith.constant dense<0.000000e+00> : vector<4x8x8xf32>
    %56 = tpu.matmul %36, %55, %cst_20 {dimension_numbers = #tpu.dot_dimension_numbers<[0], [2], [2], [1], [0, 1, 0, 2, 1, 1], [1], [0]>} : vector<8x4x8xf32>, vector<4x8x8xf32>, vector<4x8x8xf32> -> vector<4x8x8xf32>
    %57 = tpu.transpose %56, [2, 0, 1] : vector<4x8x8xf32> -> vector<8x4x8xf32>
    "tpu.trace_stop"() : () -> ()
    %58 = vector.shape_cast %57 : vector<8x4x8xf32> to vector<8x32xf32>
    %c0_21 = arith.constant 0 : index
    %c0_22 = arith.constant 0 : index
    %59 = vector.load %arg6[%c0_21, %c0_22] : memref<32x32xf32, #tpu.memory_space<vmem>>, vector<32x32xf32>
    %cst_23 = arith.constant dense<0.000000e+00> : vector<8x32xf32>
    %60 = tpu.matmul %58, %59, %cst_23 {dimension_numbers = #tpu.dot_dimension_numbers<[1], [0], [0], [1], [0, 0, 1, 1], [], []>} : vector<8x32xf32>, vector<32x32xf32>, vector<8x32xf32> -> vector<8x32xf32>
    %c0_24 = arith.constant 0 : index
    %c0_25 = arith.constant 0 : index
    %61 = vector.load %arg7[%c0_24, %c0_25] : memref<1x32xf32, #tpu.memory_space<vmem>>, vector<1x32xf32>
    %62 = vector.broadcast %61 : vector<1x32xf32> to vector<8x32xf32>
    %63 = arith.addf %60, %62 : vector<8x32xf32>
    %64 = arith.addf %1, %63 : vector<8x32xf32>
    %cst_26 = arith.constant dense<0.000000e+00> : vector<8xf32>
    %65 = vector.multi_reduction <add>, %64, %cst_26 [1] : vector<8x32xf32> to vector<8xf32>
    %66 = vector.shape_cast %65 : vector<8xf32> to vector<8x1xf32>
    %cst_27 = arith.constant 3.200000e+01 : f32
    %67 = vector.broadcast %cst_27 : f32 to vector<8x1xf32>
    %68 = arith.divf %66, %67 : vector<8x1xf32>
    %69 = vector.broadcast %68 : vector<8x1xf32> to vector<8x32xf32>
    %70 = arith.subf %64, %69 : vector<8x32xf32>
    %71 = arith.mulf %70, %70 : vector<8x32xf32>
    %cst_28 = arith.constant dense<0.000000e+00> : vector<8xf32>
    %72 = vector.multi_reduction <add>, %71, %cst_28 [1] : vector<8x32xf32> to vector<8xf32>
    %73 = vector.shape_cast %72 : vector<8xf32> to vector<8x1xf32>
    %cst_29 = arith.constant 3.200000e+01 : f32
    %74 = vector.broadcast %cst_29 : f32 to vector<8x1xf32>
    %75 = arith.divf %73, %74 : vector<8x1xf32>
    %76 = vector.broadcast %68 : vector<8x1xf32> to vector<8x32xf32>
    %77 = arith.subf %64, %76 : vector<8x32xf32>
    %cst_30 = arith.constant 9.99999974E-6 : f32
    %78 = vector.broadcast %cst_30 : f32 to vector<8x1xf32>
    %79 = arith.addf %75, %78 : vector<8x1xf32>
    %80 = math.rsqrt %79 : vector<8x1xf32>
    %81 = vector.broadcast %80 : vector<8x1xf32> to vector<8x32xf32>
    %82 = arith.mulf %77, %81 : vector<8x32xf32>
    %c0_31 = arith.constant 0 : index
    %c0_32 = arith.constant 0 : index
    %83 = vector.load %arg8[%c0_31, %c0_32] : memref<1x32xf32, #tpu.memory_space<vmem>>, vector<1x32xf32>
    %84 = vector.broadcast %83 : vector<1x32xf32> to vector<8x32xf32>
    %85 = arith.mulf %82, %84 : vector<8x32xf32>
    %c0_33 = arith.constant 0 : index
    %c0_34 = arith.constant 0 : index
    %86 = vector.load %arg9[%c0_33, %c0_34] : memref<1x32xf32, #tpu.memory_space<vmem>>, vector<1x32xf32>
    %87 = vector.broadcast %86 : vector<1x32xf32> to vector<8x32xf32>
    %88 = arith.addf %85, %87 : vector<8x32xf32>
    %c0_35 = arith.constant 0 : index
    %c0_36 = arith.constant 0 : index
    %89 = vector.load %arg10[%c0_35, %c0_36] : memref<32x64xf32, #tpu.memory_space<vmem>>, vector<32x64xf32>
    %cst_37 = arith.constant dense<0.000000e+00> : vector<8x64xf32>
    %90 = tpu.matmul %88, %89, %cst_37 {dimension_numbers = #tpu.dot_dimension_numbers<[1], [0], [0], [1], [0, 0, 1, 1], [], []>} : vector<8x32xf32>, vector<32x64xf32>, vector<8x64xf32> -> vector<8x64xf32>
    %c0_38 = arith.constant 0 : index
    %c0_39 = arith.constant 0 : index
    %91 = vector.load %arg11[%c0_38, %c0_39] : memref<1x64xf32, #tpu.memory_space<vmem>>, vector<1x64xf32>
    %92 = vector.broadcast %91 : vector<1x64xf32> to vector<8x64xf32>
    %93 = arith.addf %90, %92 : vector<8x64xf32>
    %cst_40 = arith.constant 5.000000e-01 : f32
    %94 = vector.broadcast %cst_40 : f32 to vector<8x64xf32>
    %95 = arith.mulf %94, %93 : vector<8x64xf32>
    %cst_41 = arith.constant 0.707106769 : f32
    %96 = vector.broadcast %cst_41 : f32 to vector<8x64xf32>
    %97 = arith.mulf %93, %96 : vector<8x64xf32>
    %98 = math.erf %97 : vector<8x64xf32>
    %cst_42 = arith.constant 1.000000e+00 : f32
    %99 = vector.broadcast %cst_42 : f32 to vector<8x64xf32>
    %100 = arith.addf %99, %98 : vector<8x64xf32>
    %101 = arith.mulf %95, %100 : vector<8x64xf32>
    %c0_43 = arith.constant 0 : index
    %c0_44 = arith.constant 0 : index
    %102 = vector.load %arg12[%c0_43, %c0_44] : memref<64x32xf32, #tpu.memory_space<vmem>>, vector<64x32xf32>
    %cst_45 = arith.constant dense<0.000000e+00> : vector<8x32xf32>
    %103 = tpu.matmul %101, %102, %cst_45 {dimension_numbers = #tpu.dot_dimension_numbers<[1], [0], [0], [1], [0, 0, 1, 1], [], []>} : vector<8x64xf32>, vector<64x32xf32>, vector<8x32xf32> -> vector<8x32xf32>
    %c0_46 = arith.constant 0 : index
    %c0_47 = arith.constant 0 : index
    %104 = vector.load %arg13[%c0_46, %c0_47] : memref<1x32xf32, #tpu.memory_space<vmem>>, vector<1x32xf32>
    %105 = vector.broadcast %104 : vector<1x32xf32> to vector<8x32xf32>
    %106 = arith.addf %103, %105 : vector<8x32xf32>
    %107 = arith.addf %64, %106 : vector<8x32xf32>
    %c0_48 = arith.constant 0 : index
    %c0_49 = arith.constant 0 : index
    %c0_50 = arith.constant 0 : index
    %108 = vector.load %arg14[%c0_48, %c0_49, %c0_50] : memref<1x8x32xf32, #tpu.memory_space<vmem>>, vector<1x8x32xf32>
    %109 = vector.shape_cast %108 : vector<1x8x32xf32> to vector<8x32xf32>
    %110 = vector.shape_cast %107 : vector<8x32xf32> to vector<1x8x32xf32>
    tpu.vector_store %arg14[%c0_48, %c0_49, %c0_50], %110 {strides = array<i32>} : memref<1x8x32xf32, #tpu.memory_space<vmem>>, vector<1x8x32xf32>,
    return
  }
  func.func @transform_0(%arg0: i32) -> (i32, i32, i32) {
    %c0_i32 = arith.constant 0 : i32
    %c0_i32_0 = arith.constant 0 : i32
    %c0_i32_1 = arith.constant 0 : i32
    return %arg0, %c0_i32, %c0_i32_0 : i32, i32, i32
  }
  func.func @transform_1(%arg0: i32) -> (i32, i32) {
    %c0_i32 = arith.constant 0 : i32
    %c0_i32_0 = arith.constant 0 : i32
    %c0_i32_1 = arith.constant 0 : i32
    return %c0_i32, %c0_i32_0 : i32, i32
  }
  func.func @transform_2(%arg0: i32) -> (i32, i32) {
    %c0_i32 = arith.constant 0 : i32
    %c0_i32_0 = arith.constant 0 : i32
    %c0_i32_1 = arith.constant 0 : i32
    return %c0_i32, %c0_i32_0 : i32, i32
  }
  func.func @transform_3(%arg0: i32) -> (i32, i32) {
    %c0_i32 = arith.constant 0 : i32
    %c0_i32_0 = arith.constant 0 : i32
    %c0_i32_1 = arith.constant 0 : i32
    return %c0_i32, %c0_i32_0 : i32, i32
  }
  func.func @transform_4(%arg0: i32) -> (i32, i32) {
    %c0_i32 = arith.constant 0 : i32
    %c0_i32_0 = arith.constant 0 : i32
    %c0_i32_1 = arith.constant 0 : i32
    return %c0_i32, %c0_i32_0 : i32, i32
  }
  func.func @transform_5(%arg0: i32) -> (i32, i32) {
    %c0_i32 = arith.constant 0 : i32
    %c0_i32_0 = arith.constant 0 : i32
    %c0_i32_1 = arith.constant 0 : i32
    return %c0_i32, %c0_i32_0 : i32, i32
  }
  func.func @transform_6(%arg0: i32) -> (i32, i32) {
    %c0_i32 = arith.constant 0 : i32
    %c0_i32_0 = arith.constant 0 : i32
    %c0_i32_1 = arith.constant 0 : i32
    return %c0_i32, %c0_i32_0 : i32, i32
  }
  func.func @transform_7(%arg0: i32) -> (i32, i32) {
    %c0_i32 = arith.constant 0 : i32
    %c0_i32_0 = arith.constant 0 : i32
    %c0_i32_1 = arith.constant 0 : i32
    return %c0_i32, %c0_i32_0 : i32, i32
  }
  func.func @transform_8(%arg0: i32) -> (i32, i32) {
    %c0_i32 = arith.constant 0 : i32
    %c0_i32_0 = arith.constant 0 : i32
    %c0_i32_1 = arith.constant 0 : i32
    return %c0_i32, %c0_i32_0 : i32, i32
  }
  func.func @transform_9(%arg0: i32) -> (i32, i32) {
    %c0_i32 = arith.constant 0 : i32
    %c0_i32_0 = arith.constant 0 : i32
    %c0_i32_1 = arith.constant 0 : i32
    return %c0_i32, %c0_i32_0 : i32, i32
  }
  func.func @transform_10(%arg0: i32) -> (i32, i32) {
    %c0_i32 = arith.constant 0 : i32
    %c0_i32_0 = arith.constant 0 : i32
    %c0_i32_1 = arith.constant 0 : i32
    return %c0_i32, %c0_i32_0 : i32, i32
  }
  func.func @transform_11(%arg0: i32) -> (i32, i32) {
    %c0_i32 = arith.constant 0 : i32
    %c0_i32_0 = arith.constant 0 : i32
    %c0_i32_1 = arith.constant 0 : i32
    return %c0_i32, %c0_i32_0 : i32, i32
  }
  func.func @transform_12(%arg0: i32) -> (i32, i32) {
    %c0_i32 = arith.constant 0 : i32
    %c0_i32_0 = arith.constant 0 : i32
    %c0_i32_1 = arith.constant 0 : i32
    return %c0_i32, %c0_i32_0 : i32, i32
  }
  func.func @transform_13(%arg0: i32) -> (i32, i32, i32) {
    %c0_i32 = arith.constant 0 : i32
    %c0_i32_0 = arith.constant 0 : i32
    %c0_i32_1 = arith.constant 0 : i32
    return %arg0, %c0_i32, %c0_i32_0 : i32, i32, i32
  }
}

</mosaic_0001>

<bundles_post_ra>
// kernel: tpu_custom_call.1
= control target key start
LH: loop header
LB: loop body
LE: loop exit
PB: predicated region body
PF: predicated region fallthrough
CT: control target
= control target key end

     0   :  { %18 = vsyncpa [#allocation3], 0  ;;  %s2969_s0 = inlined_call_operand.hbm [shape: f32[2,8,32], index: 0, kind: input, shape index: {}]   ;;  %s2970_s1 = inlined_call_operand.vmem [shape: f32[1,32], index: 1, kind: input, shape index: {}]   ;;  %s2971_s2 = inlined_call_operand.vmem [shape: f32[1,32], index: 2, kind: input, shape index: {}]   ;;  %s2972_s3 = inlined_call_operand.vmem [shape: f32[32,96], index: 3, kind: input, shape index: {}]   ;;  %s2973_s4 = inlined_call_operand.vmem [shape: f32[1,96], index: 4, kind: input, shape index: {}]   ;;  %s2974_s5 = inlined_call_operand.vmem [shape: f32[32,32], index: 5, kind: input, shape index: {}]   ;;  %s2975_s6 = inlined_call_operand.vmem [shape: f32[1,32], index: 6, kind: input, shape index: {}]   ;;  %s2976_s7 = inlined_call_operand.vmem [shape: f32[1,32], index: 7, kind: input, shape index: {}]   ;;  %s2977_s8 = inlined_call_operand.vmem [shape: f32[1,32], index: 8, kind: input, shape index: {}]   ;;  %s2978_s9 = inlined_call_operand.vmem [shape: f32[32,64], index: 9, kind: input, shape index: {}]   ;;  %s2979_s10 = inlined_call_operand.vmem [shape: f32[1,64], index: 10, kind: input, shape index: {}]   ;;  %s2980_s11 = inlined_call_operand.vmem [shape: f32[64,32], index: 11, kind: input, shape index: {}]   ;;  %s2981_s12 = inlined_call_operand.vmem [shape: f32[1,32], index: 12, kind: input, shape index: {}]   ;;  %s2982_s13 = inlined_call_operand.hbm [shape: f32[2,8,32], index: 13, kind: output, shape index: {}]  }
   0x1   :  { %20 = vsyncpa [#allocation3 + $0x1], 0 }
   0x2   :  { %21 = vsyncpa [#allocation4], 0 }
   0x3   :  { %23 = vsyncpa [#allocation4 + $0x1], 0  ;;  %s2625_s25 = smov 0   ;;  %s2627_s26 = smov 0  }
   0x4   :  { %s2629_s27 = smov 0   ;;  %s2631_s28 = smov 0  }
   0x5 LB: > { %2988 = sst [smem:[#allocation8_spill]] %s2526_s25  ;;  %s2646_s29 = sadd.s32 4294967295, %s2538_s28   ;;  %s2538_s28 = sphi %s2631_s28, %s3003_s28   ;;  %s2534_s27 = sphi %s2629_s27, %s3005_s27   ;;  %s2530_s26 = sphi %s2627_s26, %s3007_s26   ;;  %s2526_s25 = sphi %s2625_s25, %s3006_s25  }
   0x6   : > { %2989 = sst [smem:[#allocation9_spill]] %s2534_s27  ;;  %s2161_s30 = sadd.s32 4294967294, %s2538_s28  }
   0x7   : > { %s2650_s14 = sadd.s32 1, %s2538_s28   ;;  %s36_s15 = sadd.s32 1, %s2534_s27 }
   0x8   : > { %2990 = sst [smem:[#allocation10_spill]] %s2650_s14  ;;  %s33_s16 = ssub.s32 %s2538_s28, %s2650_s14 }
   0x9   : > { %p43_p0 = scmp.ne.s32.totalorder %s2534_s27, %s2530_s26  ;;  %p34_p1 = scmp.eq.s32.totalorder %s33_s16, 0 }
   0xa   : > { %p44_p2 = scmp.eq.s32.totalorder %s2538_s28, 0  ;;  %p49_p3 = scmp.ne.s32.totalorder %s2530_s26, %s2526_s25 }
   0xb   : > { %p50_p4 = scmp.eq.s32.totalorder %s2646_s29, 0  ;;  %p325_p7 = scmp.eq.s32.totalorder %s2646_s29, 1 }
   0xc   : > { %s2662_s17 = scalar_select %p34_p1, %s2534_s27, %s36_s15  }
   0xd   : > { %p2664_p5 = por %p44_p2, %p43_p0  ;;  %p2668_p6 = por %p50_p4, %p49_p3 }
   0xe   : > { %2991 = sst [smem:[#allocation11_spill]] %s2662_s17  ;;  %p331_p8 = scmp.eq.s32.totalorder %s2161_s30, 1 }
   0xf   : > { %p2373_p10 = scmp.lt.s32.totalorder %s2538_s28, 2  ;;  %p2675_p11 = por %p325_p7, %p43_p0 }
  0x10   : > { %p2679_p12 = por %p331_p8, %p49_p3  ;;  %s387_s22 = sand.u32 1, %s2534_s27  }
  0x11   : > { %s2994_s20 = scalar_select %p2675_p11, 1, 0 }
  0x12   : > { %s2995_s21 = scalar_select %p2679_p12, 1, 0 }
  0x13   : > { %s2165_s23 = sshll.u32 %s2538_s28, 7  ;;  %s2164_s24 = sshll.u32 %s387_s22, 3 }
  0x14   : > { %s2688_s17 = scalar_lea.hbm %s2969_s0, %s2165_s23  ;;  %s391_s30 = scalar_lea.vmem [#allocation2], %s2164_s24 }
  0x15   : > { %s398_s14 = sshll.u32 %s391_s30, 4  ;;  %p2692_p13 = pnand %p2373_p10, %p2664_p5  ;;  %s2696_s14 = int_to_ptr.vmem [resolvable:$true] %s398_s14 }
  0x16   : > { %s388_s15 = scalar_lea.sflag [#allocation3], %s387_s22  ;;  %s2442_s23 = scalar_lea.hbm %s2688_s17, 128 }
  0x17   : > { %p2443_p2 = scmp.ne.s32.totalorder %s2688_s17, %s2442_s23  ;;  %p2444_p3 = pneg %p2692_p13 }
  0x18   : > { %s2447_s16 = scalar_lea.hbm %s2969_s0, 256  ;;  %p2448_p5 = scmp.lt.u32.totalorder %s2688_s17, %s2969_s0 }
  0x19   : > { %p2445_p4 = pnand %p2444_p3, %p2443_p2  ;;  %p2449_p8 = scmp.lt.u32.totalorder %s2447_s16, %s2442_s23 }
  0x1a   : > { %p2451_p9 = scmp.lt.u32.totalorder %s2442_s23, %s2688_s17 }
  0x1b   : > { %p2446_p7 = pneg %p2445_p4  ;;  %p2450_p10 = por %p2449_p8, %p2448_p5 }
  0x1d   : > { %p2452_p0 = por %p2451_p9, %p2450_p10 }
  0x1f   : > { %p2453_p1 = pnand %p2452_p0, %p2446_p7 }
  0x21   : > { %2456 = shalt.err (!%p2453_p1)
}
  0x22   : > { %s2457_s22 = scalar_lea.vmem %s2696_s14, 128  ;;  %s2540_s18 = smov [#allocation2]  }
  0x23   : > { %p2458_p2 = scmp.ne.s32.totalorder %s2696_s14, %s2457_s22  ;;  %s2462_s24 = sshll.u32 %s2540_s18, 4  ;;  %s2463_s24 = int_to_ptr.vmem [resolvable:$false] %s2462_s24 }
  0x24   : > { %s2464_s27 = scalar_lea.vmem %s2463_s24, 256  ;;  %p2465_p11 = scmp.lt.s32.totalorder %s2696_s14, %s2463_s24 }
  0x25   : > { %p2460_p4 = pnand %p2458_p2, %p2444_p3  ;;  %p2466_p5 = scmp.lt.s32.totalorder %s2464_s27, %s2457_s22 }
  0x27   : > { %p2461_p12 = pneg %p2460_p4  ;;  %p2467_p8 = por %p2466_p5, %p2465_p11 }
  0x29   : > { %p2468_p9 = pnand %p2467_p8, %p2461_p12 }
  0x2b   : > { %2471 = shalt.err (!%p2468_p9)
}
  0x2c   : > { %2368 = dma.hbm_to_vmem [thread:$0]  (!%p2692_p13), %s2688_s17, 128, %s2696_s14, %s388_s15  }
  0x2d   : > { %p2997_p0 = scmp.lt.s32.totalorder %s2538_s28, 3  ;;  %p2998_p1 = scmp.ge.s32.totalorder %s2538_s28, 1 }
  0x2f   : > { %p404_p3 = pnand %p2998_p1, %p2997_p0 }
  0x30   : > { %s2730_s23 = sand.u32 (!%p404_p3), 1, %s2530_s26  }
  0x31   : > { %407 = sbr.rel (%p404_p3) target bundleno = 2981 (0xba5), region = 72  ;;  %s2167_s16 = sshll.u32 (!%p404_p3), %s2730_s23, 3 }
  0x32   : > { %s410_s30 = scalar_lea.sflag (!%p404_p3), [#allocation3], %s2730_s23  ;;  %s413_s25 = scalar_lea.vmem (!%p404_p3), [#allocation2], %s2167_s16 }
  0x38   : > { %2517 = dma.done.wait (%p2668_p6), %s410_s30, 128  }
  0x39   : > { %2519 = vsyncadd (%p2668_p6), %s410_s30, 4294967168  ;;  %vm457_vm0 = vcmask 261120   ;;  %v2740_v0 = vld [vmem:[%s413_s25] sm:$0xff]  ;;  %v490_v9 = vld [vmem:[%s2972_s3 + $0x10] sm:$0xff]  ;;  %v2541_v10 = vmov 0.0|0.0   ;;  %vm2542_vm1 = vmmov 0   ;;  %v579_v39 = vlaneseq }
  0x3a   : > { %v458_v1 = vsel %vm457_vm0, %v2740_v0, 0.0  ;;  %v488_v7 = vld [vmem:[%s2972_s3] sm:$0xff]  ;;  %v489_v8 = vld [vmem:[%s2972_s3 + $0x8] sm:$0xff]  ;;  %2331 = vmatprep.subr.bf16.mxu0 %v2541_v10  ;;  %v491_v12 = vld [vmem:[%s2972_s3 + $0x18] sm:$0xff]  ;;  %v2543_v13 = vmov 0.0   ;;  %s2544_s22 = smov 104  }
  0x3b   : > { %459 = vadd.xlane.f32.xlu0 %v458_v1  ;;  %v2332_v11 = vpack.c.bf16 %v489_v8, %v488_v7  ;;  %2247 = vmatprep.mubr.msk.f32.mxu0 %vm2542_vm1, %v2543_v13  ;;  %v2335_v14 = vpack.c.bf16 %v491_v12, %v490_v9  ;;  %v2169_v19 = vld [vmem:[%s2970_s1] ss:$0 sm:$0xff]  ;;  %s2545_s18 = smov 120   ;;  %s2546_s24 = smov 112   ;;  %vm725_vm2 = vcmask 64512   ;;  %v2801_v40 = vshrl.u32 %v579_v39, 7 }
  0x3c   : > { %2250 = vmatprep.subr.mxu1 %v2543_v13  ;;  %2252 = vmatprep.mubr.msk.f32.mxu1 %vm2542_vm1, %v2543_v13  ;;  %v2170_v21 = vld [vmem:[%s2971_s2] ss:$0 sm:$0xff]  ;;  %s2547_s27 = smov 96   ;;  %v582_v41 = vand.u32 127, %v579_v39  ;;  %s2548_s30 = smov 64   ;;  %vm1779_vm4 = vcmask 130048  }
  0x3d   : > { %2333 = vmatpush3.bf16.msra.mxu0 %v2332_v11  ;;  %v2171_v24 = vld [vmem:[%s2973_s4] ss:$0 sm:$0xff]  ;;  %s2553_s25 = smov 24   ;;  %vm1781_vm5 = vcmask 195584   ;;  %vm2001_vm6 = vcmask 523264   ;;  %p2999_p11 = scmp.ne.s32.totalorder %s2994_s20, 0 }
  0x3e   : > { %2334 = vmatprep.subr.bf16.mxu0 %v2541_v10  ;;  %vm583_vm3 = vcmp.gt.s32.totalorder %v582_v41, %v2801_v40 }
  0x3f   : > { %v584_v42 = vsel %vm583_vm3, -1e+30, %v2543_v13 }
  0x41   : > { %2336 = vmatpush3.bf16.msra.mxu0 %v2335_v14 }
  0x42   : > { %2265 = vmatprep.subr.mxu0 %v2543_v13 }
  0xc8   : > { %v460_v2 = vpop.xlane.xlu0 %459 }
  0xc9   : > { %v462_v3 = vmul.f32 0.03125, %v460_v2 }
  0xcb   : > { %v463_v4 = vsub.f32 %v2740_v0, %v462_v3 }
  0xcd   : > { %v464_v5 = vmul.f32 %v463_v4, %v463_v4 }
  0xcf   : > { %v465_v6 = vsel %vm457_vm0, %v464_v5, 0.0 }
  0xd0   : > { %466 = vadd.xlane.f32.xlu0 %v465_v6 }
 0x15d   : > { %v467_v15 = vpop.xlane.xlu0 %466 }
 0x15e   : > { %v468_v16 = vmul.f32 0.03125, %v467_v15 }
 0x160   : > { %v469_v17 = vadd.f32 1e-05, %v468_v16 }
 0x162   : > { %2420 = vrsqrt.f32 %v469_v17 }
 0x16c   : > { %v2421_v18 = vpop.eup %2420 }
 0x16d   : > { %v471_v20 = vmul.f32 %v2421_v18, %v463_v4 }
 0x16f   : > { %v479_v22 = vmul.f32 %v2169_v19, %v471_v20 }
 0x171   : > { %v487_v23 = vadd.f32 %v2170_v21, %v479_v22 }
 0x173   : > { %2248 = vmatmul.mubr.msk.f32.vlgmr.msra.gmra.mrb[0].mxu0 %vm457_vm0, %v487_v23 }
 0x174   : > { %2267 = vmatprep.mubr.msk.f32.mxu0 %vm2542_vm1, %v2543_v13 }
 0x246   : > { %v568_v25 = vpop.f32.mrb[0].mxu0 }
 0x247   : > { %v2778_v26 = vadd.f32 %v2171_v24, %v568_v25  ;;  %v2249_v27 = vpop.f32.mrb[1].mxu0 }
 0x249   : > { %577 = vrot.lane.b32.xlu0 %v2778_v26, %s2544_s22  ;;  %573 = vrot.lane.b32.xlu1 %v2778_v26, %s2545_s18  ;;  %s2196_s22 = sshll.u32 %s2646_s29, 7  ;;  %s455_s18 = scalar_lea.vmem [#allocation5], %s2167_s16 }
 0x24a   : > { %s2078_s29 = scalar_lea.sflag [#allocation4], %s2730_s23  ;;  %s2554_s16 = smov [#allocation5]  }
 0x24b   : > { %s2476_s17 = sshll.u32 %s2554_s16, 4  ;;  %s2477_s17 = int_to_ptr.vmem [resolvable:$false] %s2476_s17 }
 0x24c   : > { %s2478_s19 = scalar_lea.vmem %s2477_s17, 256 }
 0x24d   : > { %575 = vrot.lane.b32.xlu1 %v2778_v26, %s2546_s24  ;;  %s2091_s24 = sshll.u32 %s455_s18, 4  ;;  %s2926_s24 = int_to_ptr.vmem [resolvable:$true] %s2091_s24 }
 0x24e   : > { %s2472_s14 = scalar_lea.vmem %s2926_s24, 128  ;;  %p2479_p7 = scmp.lt.s32.totalorder %s2926_s24, %s2477_s17 }
 0x24f   : > { %p2473_p6 = scmp.ne.s32.totalorder %s2926_s24, %s2472_s14  ;;  %p2480_p10 = scmp.lt.s32.totalorder %s2478_s19, %s2472_s14 }
 0x251   : > { %585 = vrot.lane.b32.xlu1 %v2778_v26, %s2547_s27  ;;  %p2474_p12 = pnand %p2473_p6, %p2999_p11  ;;  %p2481_p2 = por %p2480_p10, %p2479_p7 }
 0x253   : > { %p2475_p13 = pneg %p2474_p12 }
 0x255   : > { %p2482_p4 = pnand %p2481_p2, %p2475_p13 }
 0x2bb   : > { %v574_v28 = vpop.permute.xlu1 %573  ;;  %v578_v30 = vpop.permute.xlu0 %577 }
 0x2bc   : > { %587 = vrot.lane.b32.xlu1 %v574_v28, %s2547_s27 }
 0x2bf   : > { %v576_v29 = vpop.permute.xlu1 %575 }
 0x2c0   : > { %589 = vrot.lane.b32.xlu1 %v576_v29, %s2547_s27 }
 0x2c3   : > { %v586_v31 = vpop.permute.xlu1 %585 }
 0x2c4   : > { %591 = vrot.lane.b32.xlu1 %v578_v30, %s2547_s27  ;;  %s2551_s27 = smov 16  }
 0x2ed   : > { %597 = vxpose.xlu1.b32.start.end [1/1] (short) (narrow) %v586_v31, 8 }
 0x32e   : > { %v588_v32 = vpop.permute.xlu1 %587 }
 0x32f   : > { %629 = vxpose.xlu0.b32.start.end [1/1] (short) (narrow) %v588_v32, 8 }
 0x332   : > { %v590_v33 = vpop.permute.xlu1 %589 }
 0x333   : > { %661 = vxpose.xlu0.b32.start.end [1/1] (short) (narrow) %v590_v33, 8 }
 0x336   : > { %v592_v34 = vpop.permute.xlu1 %591 }
 0x337   : > { %693 = vxpose.xlu0.b32.start.end [1/1] (short) (narrow) %v592_v34, 8 }
 0x36d   : > { %v613_v35 = vpop.trf.xlu1 }
 0x36e   : > { %2251 = vmatpush3.msra.mxu1 %v613_v35 }
 0x36f   : > { %2253 = vmatmul.mubr.msk.f32.vlgmr.msra.gmra.mrb[0].mxu1 %vm725_vm2, %v2778_v26  ;;  %2255 = vmatprep.subr.mxu1 %v2543_v13 }
 0x370   : > { %2257 = vmatprep.mubr.msk.f32.mxu1 %vm2542_vm1, %v2543_v13 }
 0x3af   : > { %v645_v36 = vpop.trf.xlu0 }
 0x3b0   : > { %2256 = vmatpush3.msra.mxu1 %v645_v36 }
 0x3b1   : > { %2258 = vmatmul.mubr.msk.f32.vlgmr.msra.gmra.mrb[2].mxu1 %vm725_vm2, %v574_v28  ;;  %2260 = vmatprep.subr.mxu1 %v2543_v13 }
 0x3b2   : > { %2262 = vmatprep.mubr.msk.f32.mxu1 %vm2542_vm1, %v2543_v13 }
 0x3b3   : > { %v677_v37 = vpop.trf.xlu0 }
 0x3b4   : > { %2261 = vmatpush3.msra.mxu1 %v677_v37 }
 0x3b5   : > { %2263 = vmatmul.mubr.msk.f32.vlgmr.msra.gmra.mrb[4].mxu1 %vm725_vm2, %v576_v29  ;;  %2270 = vmatprep.subr.mxu1 %v2543_v13 }
 0x3b6   : > { %2272 = vmatprep.mubr.msk.f32.mxu1 %vm2542_vm1, %v2543_v13 }
 0x3b7   : > { %v709_v38 = vpop.trf.xlu0 }
 0x3b8   : > { %2266 = vmatpush3.msra.mxu0 %v709_v38 }
 0x3b9   : > { %2268 = vmatmul.mubr.msk.f32.vlgmr.msra.gmra.mrb[2].mxu0 %vm725_vm2, %v578_v30  ;;  %2275 = vmatprep.subr.mxu0 %v2543_v13 }
 0x3ba   : > { %2277 = vmatprep.mubr.msk.f32.mxu0 %vm2542_vm1, %v2543_v13 }
 0x442   : > { %v794_v43 = vpop.f32.mrb[0].mxu1 }
 0x443   : > { %v795_v44 = vadd.f32 %v794_v43, %v584_v42  ;;  %v2254_v45 = vpop.f32.mrb[1].mxu1 }
 0x445   : > { %v1014_v46 = vsel %vm725_vm2, %v795_v44, -inf }
 0x446   : > { %1015 = vmax.xlane.f32.xlu1 %v1014_v46 }
 0x484   : > { %v866_v47 = vpop.f32.mrb[2].mxu1 }
 0x485   : > { %v867_v48 = vadd.f32 %v866_v47, %v584_v42  ;;  %v2259_v49 = vpop.f32.mrb[3].mxu1  ;;  %v1783_v47 = vld [vmem:[%s2974_s5] sm:$0xff] }
 0x487   : > { %v1017_v50 = vsel %vm725_vm2, %v867_v48, -inf }
 0x488   : > { %1018 = vmax.xlane.f32.xlu0 %v1017_v50  ;;  %v938_v51 = vpop.f32.mrb[4].mxu1 }
 0x489   : > { %v939_v52 = vadd.f32 %v938_v51, %v584_v42  ;;  %v2264_v53 = vpop.f32.mrb[5].mxu1  ;;  %v2549_v51 = vmov 1983009808  }
 0x48a   : > { %v2550_v53 = vmov 1934713408  }
 0x48b   : > { %v1020_v54 = vsel %vm725_vm2, %v939_v52, -inf }
 0x48c   : > { %1021 = vmax.xlane.f32.xlu1 %v1020_v54  ;;  %v1010_v55 = vpop.f32.mrb[2].mxu0  ;;  %v1665_v54 = vunpack.c.l.s4 %v2550_v53 }
 0x48d   : > { %v1011_v56 = vadd.f32 %v1010_v55, %v584_v42  ;;  %v2269_v57 = vpop.f32.mrb[3].mxu0 }
 0x48f   : > { %v1023_v58 = vsel %vm725_vm2, %v1011_v56, -inf }
 0x490   : > { %1024 = vmax.xlane.f32.xlu1 %v1023_v58  ;;  %v1666_v58 = vunpack.c.0.s8 %v1665_v54 }
 0x49e   : > { %1060 = vrot.lane.b32.xlu0 %v574_v28, %s2548_s30 }
 0x4a1   : > { %1058 = vrot.lane.b32.xlu1 %v2778_v26, %s2548_s30 }
 0x4a5   : > { %1062 = vrot.lane.b32.xlu1 %v576_v29, %s2548_s30 }
 0x4a9   : > { %1064 = vrot.lane.b32.xlu1 %v578_v30, %s2548_s30  ;;  %s2552_s30 = smov 8  }
 0x4d3   : > { %v1016_v59 = vpop.xlane.xlu1 %1015 }
 0x4d4   : > { %v1026_v60 = vsub.f32 %v795_v44, %v1016_v59 }
 0x4d6   : > { %v1030_v61 = vmul.f32 1.442695, %v1026_v60 }
 0x4d8   : > { %2422 = vpow2.f32 %v1030_v61 }
 0x4e2   : > { %v2423_v62 = vpop.eup %2422 }
 0x4e3   : > { %v1038_v63 = vsel %vm725_vm2, %v2423_v62, 0.0 }
 0x4e4   : > { %1039 = vadd.xlane.f32.xlu0 %v1038_v63 }
 0x515   : > { %v1019_v1 = vpop.xlane.xlu0 %1018 }
 0x516   : > { %v1027_v2 = vsub.f32 %v867_v48, %v1019_v1  ;;  %v1784_v48 = vld [vmem:[%s2974_s5 + $0x8] sm:$0xff] }
 0x517   : > { %v2338_v49 = vpack.c.bf16 %v1784_v48, %v1783_v47 }
 0x518   : > { %v1032_v3 = vmul.f32 1.442695, %v1027_v2  ;;  %v1669_v2 = vsub.s32 %v1666_v58, %v2801_v40  ;;  %v1899_v58 = vld [vmem:[%s2978_s9 + $0x10] sm:$0xff] }
 0x519   : > { %v1022_v4 = vpop.xlane.xlu1 %1021  ;;  %v1061_v19 = vpop.permute.xlu0 %1060 }
 0x51a   : > { %2424 = vpow2.f32 %v1032_v3  ;;  %v1028_v5 = vsub.f32 %v939_v52, %v1022_v4  ;;  %v1633_v52 = vunpack.c.l.s4 %v2549_v51 }
 0x51c   : > { %v1034_v8 = vmul.f32 1.442695, %v1028_v5 }
 0x51d   : > { %v1025_v6 = vpop.xlane.xlu1 %1024 }
 0x51e   : > { %v1029_v7 = vsub.f32 %v1011_v56, %v1025_v6  ;;  %v1634_v56 = vunpack.c.0.s8 %v1633_v52 }
 0x520   : > { %v1036_v9 = vmul.f32 1.442695, %v1029_v7  ;;  %v1637_v59 = vsub.s32 %v1634_v56, %v2801_v40  ;;  %v1897_v56 = vld [vmem:[%s2978_s9] sm:$0xff] }
 0x521   : > { %v1059_v18 = vpop.permute.xlu1 %1058 }
 0x522   : > { %2426 = vpow2.f32 %v1036_v9 }
 0x523   : > { %2428 = vpow2.f32 %v1034_v8 }
 0x524   : > { %v2425_v11 = vpop.eup %2424 }
 0x525   : > { %v1041_v12 = vsel %vm725_vm2, %v2425_v11, 0.0  ;;  %v1063_v20 = vpop.permute.xlu1 %1062 }
 0x526   : > { %1042 = vadd.xlane.f32.xlu1 %v1041_v12  ;;  %v1785_v12 = vld [vmem:[%s2974_s5 + $0x10] sm:$0xff] }
 0x529   : > { %v1065_v21 = vpop.permute.xlu1 %1064 }
 0x52c   : > { %v2427_v14 = vpop.eup %2426 }
 0x52d   : > { %v1047_v15 = vsel %vm725_vm2, %v2427_v14, 0.0  ;;  %v2429_v16 = vpop.eup %2428 }
 0x52e   : > { %1048 = vadd.xlane.f32.xlu0 %v1047_v15  ;;  %v1044_v17 = vsel %vm725_vm2, %v2429_v16, 0.0 }
 0x532   : > { %1045 = vadd.xlane.f32.xlu0 %v1044_v17 }
 0x559   : > { %1070 = vxpose.xlu1.b32.start.end [1/1] (short) (narrow) %v1059_v18, 8 }
 0x55f   : > { %1102 = vxpose.xlu0.b32.start.end [1/1] (short) (narrow) %v1061_v19, 8 }
 0x563   : > { %1134 = vxpose.xlu0.b32.start.end [1/1] (short) (narrow) %v1063_v20, 8 }
 0x567   : > { %1166 = vxpose.xlu0.b32.start.end [1/1] (short) (narrow) %v1065_v21, 8 }
 0x571   : > { %v1040_v22 = vpop.xlane.xlu0 %1039 }
 0x572   : > { %2430 = vrcp.f32 %v1040_v22 }
 0x57c   : > { %v2431_v23 = vpop.eup %2430 }
 0x57d   : > { %v1051_v24 = vmul.f32 %v2431_v23, %v2423_v62 }
 0x57f   : > { %2271 = vmatpush3.xpose.msk.msra.mxu1 %vm725_vm2, %v1051_v24 }
 0x580   : > { %2280 = vmatprep.subr.mxu1 %v2543_v13 }
 0x5b3   : > { %v1043_v25 = vpop.xlane.xlu1 %1042 }
 0x5b4   : > { %2432 = vrcp.f32 %v1043_v25 }
 0x5bb   : > { %v1049_v28 = vpop.xlane.xlu0 %1048 }
 0x5be   : > { %v2433_v26 = vpop.eup %2432 }
 0x5bf   : > { %v1053_v27 = vmul.f32 %v2433_v26, %v2425_v11  ;;  %v1046_v29 = vpop.xlane.xlu0 %1045 }
 0x5c0   : > { %2434 = vrcp.f32 %v1046_v29 }
 0x5c1   : > { %2276 = vmatpush3.xpose.msk.msra.mxu0 %vm725_vm2, %v1053_v27  ;;  %2436 = vrcp.f32 %v1049_v28 }
 0x5c2   : > { %2285 = vmatprep.subr.mxu0 %v2543_v13 }
 0x5ca   : > { %v2435_v30 = vpop.eup %2434 }
 0x5cb   : > { %v1055_v31 = vmul.f32 %v2435_v30, %v2429_v16  ;;  %v2437_v33 = vpop.eup %2436 }
 0x5cc   : > { %v1057_v34 = vmul.f32 %v2437_v33, %v2427_v14  ;;  %v1786_v14 = vld [vmem:[%s2974_s5 + $0x18] sm:$0xff] }
 0x5cd   : > { %v2341_v18 = vpack.c.bf16 %v1786_v14, %v1785_v12  ;;  %v1989_v12 = vld [vmem:[%s2980_s11 + $0x18] sm:$0xff] }
 0x5d9   : > { %v1086_v32 = vpop.trf.xlu1 }
 0x5da   : > { %2273 = vmatmul.mubr.msk.f32.vlgmr.msra.gmra.mrb[6].mxu1 %vm725_vm2, %v1086_v32 }
 0x5db   : > { %2281 = vmatpush3.xpose.msk.msra.mxu1 %vm725_vm2, %v1055_v31  ;;  %2282 = vmatprep.mubr.msk.f32.mxu1 %vm2542_vm1, %v2543_v13 }
 0x5dc   : > { %2349 = vmatprep.subr.bf16.mxu1 %v2541_v10 }
 0x5df   : > { %v1118_v35 = vpop.trf.xlu0 }
 0x5e0   : > { %2278 = vmatmul.mubr.msk.f32.vlgmr.msra.gmra.mrb[4].mxu0 %vm725_vm2, %v1118_v35 }
 0x5e1   : > { %2286 = vmatpush3.xpose.msk.msra.mxu0 %vm725_vm2, %v1057_v34  ;;  %2287 = vmatprep.mubr.msk.f32.mxu0 %vm2542_vm1, %v2543_v13 }
 0x5e2   : > { %2337 = vmatprep.subr.bf16.mxu0 %v2541_v10 }
 0x5e3   : > { %v1150_v36 = vpop.trf.xlu0 }
 0x5e4   : > { %2283 = vmatmul.mubr.msk.f32.vlgmr.msra.gmra.mrb[8].mxu1 %vm725_vm2, %v1150_v36 }
 0x5e5   : > { %2328 = vmatprep.mubr.msk.f32.mxu1 %vm2542_vm1, %v2543_v13 }
 0x5e7   : > { %v1182_v37 = vpop.trf.xlu0 }
 0x5e8   : > { %2288 = vmatmul.mubr.msk.f32.vlgmr.msra.gmra.mrb[6].mxu0 %vm725_vm2, %v1182_v37 }
 0x5e9   : > { %2298 = vmatprep.mubr.msk.f32.mxu0 %vm2542_vm1, %v2543_v13  ;;  %2339 = vmatpush3.bf16.msra.mxu0 %v2338_v49 }
 0x5ea   : > { %2340 = vmatprep.subr.bf16.mxu0 %v2541_v10 }
 0x5ed   : > { %2342 = vmatpush3.bf16.msra.mxu0 %v2341_v18  ;;  %v1993_v18 = vld [vmem:[%s2980_s11 + $0x38] sm:$0xff] }
 0x5ee   : > { %2343 = vmatprep.subr.bf16.mxu0 %v2541_v10 }
 0x6ad   : > { %v1270_v38 = vpop.f32.mrb[6].mxu1 }
 0x6ae   : > { %1502 = vxpose.xlu1.b32.start.end [1/1] (short) (narrow) %v1270_v38, 8  ;;  %v2274_v39 = vpop.f32.mrb[7].mxu1 }
 0x6b3   : > { %v1346_v41 = vpop.f32.mrb[4].mxu0 }
 0x6b4   : > { %v2279_v42 = vpop.f32.mrb[5].mxu0  ;;  %1534 = vxpose.xlu0.b32.start.end [1/1] (short) (narrow) %v1346_v41, 8 }
 0x6b7   : > { %v1422_v43 = vpop.f32.mrb[8].mxu1 }
 0x6b8   : > { %v2284_v44 = vpop.f32.mrb[9].mxu1  ;;  %1566 = vxpose.xlu1.b32.start.end [1/1] (short) (narrow) %v1422_v43, 8 }
 0x6bb   : > { %v1498_v45 = vpop.f32.mrb[6].mxu0 }
 0x6bc   : > { %1598 = vxpose.xlu0.b32.start.end [1/1] (short) (narrow) %v1498_v45, 8  ;;  %v2289_v46 = vpop.f32.mrb[7].mxu0 }
 0x6bd   : > { %v2187_v46 = vld [vmem:[%s2975_s6] ss:$0 sm:$0xff] }
 0x72e   : > { %v1518_v50 = vpop.trf.xlu1 }
 0x734   : > { %v1550_v55 = vpop.trf.xlu0 }
 0x738   : > { %v1582_v57 = vpop.trf.xlu1 }
 0x739   : > { %v1630_v60 = vcombine.low %v1518_v50, %v1582_v57  ;;  %v1631_v61 = vcombine.high %v1518_v50, %v1582_v57 }
 0x73b   : > { %v1638_v3 = vrot.slane %v1630_v60, %v1637_v59  ;;  %v1645_v4 = vrot.slane %v1631_v61, %v1637_v59 }
 0x73c   : > { %v1614_v62 = vpop.trf.xlu0 }
 0x73d   : > { %v1646_v63 = vcombine.low %v1550_v55, %v1614_v62  ;;  %v1647_v1 = vcombine.high %v1550_v55, %v1614_v62 }
 0x73f   : > { %v1654_v5 = vrot.slane %v1646_v63, %v1637_v59  ;;  %v1661_v6 = vrot.slane %v1647_v1, %v1637_v59 }
 0x741   : > { %v1662_v7 = vcombine.low %v1638_v3, %v1654_v5  ;;  %v1663_v8 = vcombine.high %v1638_v3, %v1654_v5  ;;  %v1678_v9 = vcombine.low %v1645_v4, %v1661_v6  ;;  %v1679_v11 = vcombine.high %v1645_v4, %v1661_v6  ;;  %v2190_v4 = vld [vmem:[%s2977_s8] ss:$0 sm:$0xff] }
 0x743   : > { %v1670_v15 = vrot.slane %v1662_v7, %v1669_v2  ;;  %v1677_v16 = vrot.slane %v1663_v8, %v1669_v2  ;;  %v1686_v17 = vrot.slane %v1678_v9, %v1669_v2  ;;  %v1693_v40 = vrot.slane %v1679_v11, %v1669_v2  ;;  %v1986_v7 = vld [vmem:[%s2980_s11] sm:$0xff]  ;;  %v1987_v8 = vld [vmem:[%s2980_s11 + $0x8] sm:$0xff]  ;;  %v1988_v11 = vld [vmem:[%s2980_s11 + $0x10] sm:$0xff] }
 0x744   : > { %v2350_v9 = vpack.c.bf16 %v1987_v8, %v1986_v7  ;;  %v2353_v14 = vpack.c.bf16 %v1989_v12, %v1988_v11 }
 0x745   : > { %v1698_v19 = vcombine.low %v1670_v15, %v1677_v16  ;;  %v2185_v20 = vcombine.high %v1670_v15, %v1677_v16  ;;  %v1714_v21 = vcombine.low %v1686_v17, %v1693_v40  ;;  %v2186_v22 = vcombine.high %v1686_v17, %v1693_v40  ;;  %v1990_v15 = vld [vmem:[%s2980_s11 + $0x20] sm:$0xff]  ;;  %v1991_v16 = vld [vmem:[%s2980_s11 + $0x28] sm:$0xff]  ;;  %v1992_v40 = vld [vmem:[%s2980_s11 + $0x30] sm:$0xff] }
 0x746   : > { %2351 = vmatpush3.bf16.msra.mxu1 %v2350_v9  ;;  %v2356_v17 = vpack.c.bf16 %v1991_v16, %v1990_v15 }
 0x747   : > { %v1705_v23 = vrot.slane %v1698_v19, %v1637_v59  ;;  %v1713_v24 = vrot.slane %v2185_v20, %v1637_v59  ;;  %v1721_v25 = vrot.slane %v1714_v21, %v1637_v59  ;;  %v1729_v26 = vrot.slane %v2186_v22, %v1637_v59  ;;  %v1900_v59 = vld [vmem:[%s2978_s9 + $0x18] sm:$0xff]  ;;  %2352 = vmatprep.subr.bf16.mxu1 %v2541_v10  ;;  %v2191_v20 = vld [vmem:[%s2979_s10] ss:$0 sm:$0xff] }
 0x748   : > { %v2347_v60 = vpack.c.bf16 %v1900_v59, %v1899_v58  ;;  %v2359_v19 = vpack.c.bf16 %v1993_v18, %v1992_v40 }
 0x749   : > { %v1731_v27 = vcombine.high %v1705_v23, %v1713_v24  ;;  %v1747_v28 = vcombine.high %v1721_v25, %v1729_v26  ;;  %v1730_v29 = vcombine.low %v1705_v23, %v1713_v24  ;;  %v1746_v30 = vcombine.low %v1721_v25, %v1729_v26 }
 0x74a   : > { %2354 = vmatpush3.bf16.msra.mxu1 %v2353_v14 }
 0x74b   : > { %v1745_v31 = vrot.slane %v1731_v27, %v1669_v2  ;;  %v1761_v32 = vrot.slane %v1747_v28, %v1669_v2  ;;  %v1738_v33 = vrot.slane %v1730_v29, %v1669_v2  ;;  %v1754_v34 = vrot.slane %v1746_v30, %v1669_v2  ;;  %v2189_v2 = vld [vmem:[%s2976_s7] ss:$0 sm:$0xff]  ;;  %2355 = vmatprep.subr.bf16.mxu1 %v2541_v10 }
 0x74c   : > { %v2193_v28 = vld [vmem:[%s2981_s12] ss:$0 sm:$0xff] }
 0x74d   : > { %v1764_v35 = vcombine.low %v1745_v31, %v1761_v32  ;;  %v1763_v36 = vcombine.high %v1738_v33, %v1754_v34  ;;  %v1762_v37 = vcombine.low %v1738_v33, %v1754_v34  ;;  %v1765_v38 = vcombine.high %v1745_v31, %v1761_v32 }
 0x74e   : > { %2357 = vmatpush3.bf16.msra.mxu1 %v2356_v17 }
 0x74f   : > { %1771 = vrot.lane.b32.xlu0 %v1764_v35, %s2551_s27  ;;  %1767 = vrot.lane.b32.xlu1 %v1763_v36, %s2552_s30 }
 0x750   : > { %2358 = vmatprep.subr.bf16.mxu1 %v2541_v10 }
 0x752   : > { %2360 = vmatpush3.bf16.msra.mxu1 %v2359_v19 }
 0x753   : > { %1775 = vrot.lane.b32.xlu1 %v1765_v38, %s2553_s25  ;;  %s2924_s25 = scalar_lea.hbm %s2982_s13, %s2196_s22 }
 0x7c1   : > { %v1768_v39 = vpop.permute.xlu1 %1767  ;;  %v1772_v41 = vpop.permute.xlu0 %1771 }
 0x7c2   : > { %v1778_v42 = vsel %vm725_vm2, %v1762_v37, %v1768_v39 }
 0x7c3   : > { %v1780_v44 = vsel %vm1779_vm4, %v1778_v42, %v1772_v41 }
 0x7c5   : > { %v1776_v43 = vpop.permute.xlu1 %1775 }
 0x7c6   : > { %v1782_v45 = vsel %vm1781_vm5, %v1780_v44, %v1776_v43 }
 0x7c7   : > { %2299 = vmatmul.mubr.msk.f32.vlgmr.msra.gmra.mrb[8].mxu0 %vm457_vm0, %v1782_v45 }
 0x7c8   : > { %2309 = vmatprep.mubr.msk.f32.mxu0 %vm2542_vm1, %v2543_v13 }
 0x89a   : > { %v1863_v47 = vpop.f32.mrb[8].mxu0 }
 0x89b   : > { %v1864_v48 = vadd.f32 %v2187_v46, %v1863_v47  ;;  %v2300_v49 = vpop.f32.mrb[9].mxu0 }
 0x89d   : > { %v2858_v50 = vadd.f32 %v1864_v48, %v2740_v0  ;;  %v1898_v0 = vld [vmem:[%s2978_s9 + $0x8] sm:$0xff] }
 0x89e   : > { %v2344_v57 = vpack.c.bf16 %v1898_v0, %v1897_v56 }
 0x89f   : > { %v1868_v51 = vsel %vm457_vm0, %v2858_v50, 0.0 }
 0x8a0   : > { %1869 = vadd.xlane.f32.xlu1 %v1868_v51  ;;  %2345 = vmatpush3.bf16.msra.mxu0 %v2344_v57 }
 0x8a1   : > { %2346 = vmatprep.subr.bf16.mxu0 %v2541_v10 }
 0x8a4   : > { %2348 = vmatpush3.bf16.msra.mxu0 %v2347_v60 }
 0x92d   : > { %v1870_v52 = vpop.xlane.xlu1 %1869 }
 0x92e   : > { %v1871_v53 = vmul.f32 0.03125, %v1870_v52 }
 0x930   : > { %v1872_v54 = vsub.f32 %v2858_v50, %v1871_v53 }
 0x932   : > { %v1873_v55 = vmul.f32 %v1872_v54, %v1872_v54 }
 0x934   : > { %v1874_v13 = vsel %vm457_vm0, %v1873_v55, 0.0 }
 0x935   : > { %1875 = vadd.xlane.f32.xlu0 %v1874_v13 }
 0x9c2   : > { %v1876_v61 = vpop.xlane.xlu0 %1875 }
 0x9c3   : > { %v1877_v62 = vmul.f32 0.03125, %v1876_v61 }
 0x9c5   : > { %v1878_v63 = vadd.f32 1e-05, %v1877_v62 }
 0x9c7   : > { %2438 = vrsqrt.f32 %v1878_v63 }
 0x9d1   : > { %v2439_v1 = vpop.eup %2438 }
 0x9d2   : > { %v1880_v3 = vmul.f32 %v2439_v1, %v1872_v54 }
 0x9d4   : > { %v1888_v5 = vmul.f32 %v2189_v2, %v1880_v3 }
 0x9d6   : > { %v1896_v6 = vadd.f32 %v2190_v4, %v1888_v5 }
 0x9d8   : > { %2310 = vmatmul.mubr.msk.f32.vlgmr.msra.gmra.mrb[10].mxu0 %vm457_vm0, %v1896_v6 }
 0xaab   : > { %v1977_v21 = vpop.f32.mrb[10].mxu0 }
 0xaac   : > { %v1978_v22 = vadd.f32 %v2191_v20, %v1977_v21  ;;  %v2311_v23 = vpop.f32.mrb[11].mxu0 }
 0xaae   : > { %v1982_v10 = vmul.f32 0.70710677, %v1978_v22  ;;  %v1981_v25 = vmul.f32 0.5, %v1978_v22 }
 0xab0   : > { %2440 = verf.f32 %v1982_v10 }
 0xaba   : > { %v2441_v24 = vpop.eup %2440 }
 0xabb   : > { %v1984_v26 = vadd.f32 1.0, %v2441_v24 }
 0xabd   : > { %v1985_v27 = vmul.f32 %v1984_v26, %v1981_v25 }
 0xabf   : > { %2329 = vmatmul.mubr.msk.f32.vlgmr.msra.gmra.mrb[10].mxu1 %vm2001_vm6, %v1985_v27 }
 0xb92   : > { %v2071_v29 = vpop.f32.mrb[10].mxu1 }
 0xb93   : > { %v2072_v30 = vadd.f32 %v2193_v28, %v2071_v29  ;;  %v2330_v31 = vpop.f32.mrb[11].mxu1 }
 0xb95   : > { %v2075_v32 = vadd.f32 %v2072_v30, %v2858_v50 }
 0xb97   : > { %2076 = vst.msk [vmem:[%s455_s18] sm:$0xff] %vm457_vm0, %v2075_v32 }
 0xb98   : > { %2485 = shalt.err (!%p2482_p4)
}
 0xb99   : > { %s2486_s23 = scalar_lea.hbm %s2924_s25, 128  ;;  %s2490_s18 = scalar_lea.hbm %s2982_s13, 256 }
 0xb9a   : > { %p2487_p5 = scmp.ne.s32.totalorder %s2924_s25, %s2486_s23  ;;  %p2491_p0 = scmp.lt.u32.totalorder %s2924_s25, %s2982_s13 }
 0xb9b   : > { %p2492_p1 = scmp.lt.u32.totalorder %s2490_s18, %s2486_s23  ;;  %p2494_p6 = scmp.lt.u32.totalorder %s2486_s23, %s2924_s25 }
 0xb9c   : > { %p2488_p8 = pnand %p2487_p5, %p2999_p11 }
 0xb9d   : > { %p2493_p3 = por %p2492_p1, %p2491_p0 }
 0xb9e   : > { %p2489_p9 = pneg %p2488_p8 }
 0xb9f   : > { %p2495_p12 = por %p2494_p6, %p2493_p3 }
 0xba1   : > { %p2496_p13 = pnand %p2495_p12, %p2489_p9 }
 0xba3   : > { %2499 = shalt.err (!%p2496_p13)
}
 0xba4   : > { %2363 = dma.vmem_to_hbm [thread:$0]  (%p2999_p11), %s2926_s24, 128, %s2924_s25, %s2078_s29  }
 0xba5 PF: > { %s3000_s14 = sld [smem:[#allocation8_spill]]  ;;  %p3001_p7 = scmp.ne.s32.totalorder %s2995_s21, 0 }
 0xba6   : > { %p3002_p10 = scmp.ge.s32.totalorder %s2538_s28, 2 }
 0xba8   : > { %p2370_p2 = pnand %p3002_p10, %p3001_p7 }
 0xbab   : > { %s2103_s16 = sand.u32 1, %s3000_s14  }
 0xbac   : > { %s2104_s17 = scalar_lea.sflag [#allocation4], %s2103_s16 }
 0xbad   : > { %2521 = dma.done.wait (!%p2370_p2), %s2104_s17, 128  }
 0xbae   : > { %2523 = vsyncadd (!%p2370_p2), %s2104_s17, 4294967168  ;;  %s3003_s28 = sld [smem:[#allocation10_spill]]  ;;  %s3004_s19 = sld [smem:[#allocation9_spill]] }
 0xbaf   : > { %s3005_s27 = sld [smem:[#allocation11_spill]]  ;;  %s3006_s25 = smov %s2530_s26 }
 0xbb4   : > { %p26_p4 = scmp.ge.s32.totalorder %s3003_s28, 4   ;;  %s3007_s26 = smov %s3004_s19 }
 0xbb6   :  { %28 = sbr.rel (!%p26_p4) target bundleno = 5 (0x5), region = 117 }
 0xbbd   :  { %2109 = vsyncpa [#allocation3], 1 }
 0xbbe   :  { %2111 = vsyncpa [#allocation3 + $0x1], 1 }
 0xbbf   :  { %2112 = vsyncpa [#allocation4], 1 }
 0xbc0   :  { %2114 = vsyncpa [#allocation4 + $0x1], 1 }

</bundles_post_ra>
